<compile_context>
chip_gen: v6e
topology: v6e:2x2x1
jax: 0.10.0
libtpu: 0.0.40
codegen_flags: <defaults>
</compile_context>

<pallas_src>
import jax
import jax.numpy as jnp
from jax.experimental import pallas as pl
from jax.experimental.pallas import tpu as pltpu

IN_FEATURES = 28 * 28   # 784
OUT_FEATURES = 10


def _round_up(n, m):
    return ((n + m - 1) // m) * m


def _pick_config():
    """Per-generation batch tile + optional VMEM scoped-limit override."""
    max_tb, vmem_limit = 2048, None          # safe on v5e/v6e/v7x defaults
    try:
        info = pltpu.get_tpu_info()
        vmem_bytes = int(getattr(info, "vmem_capacity_bytes", 128 << 20))
        if vmem_bytes <= (64 << 20):
            # v7x-class: 64 MiB physical VMEM per TC but ~3.2 TB/s HBM.
            # TB=4096 -> ~25 MiB double-buffered x; bump scoped limit to 40 MiB.
            max_tb, vmem_limit = 4096, 40 << 20
    except Exception:
        pass                                  # fall back to the safe default
    return max_tb, vmem_limit


_MAX_TB, _VMEM_LIMIT = _pick_config()


def linear_kernel(x_ref, w_ref, o_ref):
    # x_ref: (tb, 784) VMEM tile (auto double-buffered across the batch grid)
    # w_ref: (784, 10) VMEM tile, resident across all grid steps
    # o_ref: (tb, 10)
    o_ref[...] = jnp.dot(
        x_ref[...], w_ref[...], preferred_element_type=jnp.float32
    ).astype(o_ref.dtype)


@jax.jit
def linear_forward(x, w):
    """x: (B, 784) float32, w: (10, 784) float32 (PyTorch layout). Returns (B, 10)."""
    B = x.shape[0]

    # One-time tiny (31 KB) transpose outside the kernel: RHS contracts on its
    # leading axis, so the MXU sees it in the natural layout every grid step.
    w_t = w.T  # (784, 10)

    # Batch tile: multiple of 8, capped so large batches give >= 2 grid steps
    # (megacore sharding on v7x), and capped at the per-generation max.
    tb = min(_MAX_TB, max(8, _round_up(pl.cdiv(B, 2), 8)))
    n_tiles = pl.cdiv(B, tb)   # partial last block handled by the pipeline

    cost = pl.CostEstimate(
        flops=2 * B * IN_FEATURES * OUT_FEATURES,
        transcendentals=0,
        bytes_accessed=(B * IN_FEATURES
                        + IN_FEATURES * OUT_FEATURES
                        + B * OUT_FEATURES) * 4,
    )

    cp_kwargs = dict(dimension_semantics=("parallel",))
    if _VMEM_LIMIT is not None:
        cp_kwargs["vmem_limit_bytes"] = _VMEM_LIMIT

    return pl.pallas_call(
        linear_kernel,
        out_shape=jax.ShapeDtypeStruct((B, OUT_FEATURES), x.dtype),
        grid_spec=pltpu.PrefetchScalarGridSpec(
            num_scalar_prefetch=0,
            grid=(n_tiles,),
            in_specs=[
                # x: one (tb, 784) tile per grid step (784 == full array dim).
                pl.BlockSpec((tb, IN_FEATURES), lambda i: (i, 0)),
                # weight: full array, constant index_map -> fetched once, resident.
                pl.BlockSpec((IN_FEATURES, OUT_FEATURES), lambda i: (0, 0)),
            ],
            out_specs=pl.BlockSpec((tb, OUT_FEATURES), lambda i: (i, 0)),
        ),
        compiler_params=pltpu.CompilerParams(**cp_kwargs),
        cost_estimate=cost,
    )(x, w_t)


if __name__ == "__main__":
    key = jax.random.PRNGKey(0)
    kx, kw = jax.random.split(key)

    # Deterministic synthetic parameters (Kaiming-uniform-ish scale, like nn.Linear init).
    bound = 1.0 / (IN_FEATURES ** 0.5)
    w = jax.random.uniform(
        kw, (OUT_FEATURES, IN_FEATURES), dtype=jnp.float32, minval=-bound, maxval=bound
    )

    # Main small-shape check (B multiple of 8).
    B = 8
    x = jax.random.normal(kx, (B, IN_FEATURES), dtype=jnp.float32)
    out = jax.block_until_ready(linear_forward(x, w))
    ref = x @ w.T
    assert out.shape == (B, OUT_FEATURES), out.shape
    assert jnp.allclose(out, ref, atol=1e-4, rtol=1e-4), "mismatch vs reference (B=8)"

    # Partial-block check: B not a multiple of the tile -> exercises the
    # no-pad cdiv-grid path (OOB rows never reach the (B, 10) output).
    B2 = 13
    x2 = jax.random.normal(kx, (B2, IN_FEATURES), dtype=jnp.float32)
    out2 = jax.block_until_ready(linear_forward(x2, w))
    ref2 = x2 @ w.T
    assert out2.shape == (B2, OUT_FEATURES), out2.shape
    assert jnp.allclose(out2, ref2, atol=1e-4, rtol=1e-4), "mismatch vs reference (B=13)"

    print("KERNEL_OK")
</pallas_src>

<mosaic_0001>
module attributes {stable_mosaic.version = 11 : i64} {
  func.func @linear_kernel(%arg0: i32, %arg1: memref<8x784xf32, #tpu.memory_space<vmem>>, %arg2: memref<784x10xf32, #tpu.memory_space<vmem>>, %arg3: memref<8x10xf32, #tpu.memory_space<vmem>>) attributes {dimension_semantics = [#tpu.dimension_semantics<parallel>], iteration_bounds = array<i64: 1>, scalar_prefetch = 0 : i64, scratch_operands = 0 : i64, tpu.core_type = #tpu.core_type<tc>, window_params = [{transform_indices = @transform_0, window_bounds = array<i64: 8, 784>}, {pipeline_mode = #tpu.pipeline_mode<synchronous>, transform_indices = @transform_1, window_bounds = array<i64: 784, 10>}, {transform_indices = @transform_2, window_bounds = array<i64: 8, 10>}]} {
    %c0 = arith.constant 0 : index
    %c0_0 = arith.constant 0 : index
    %0 = vector.load %arg1[%c0, %c0_0] : memref<8x784xf32, #tpu.memory_space<vmem>>, vector<8x784xf32>
    %c0_1 = arith.constant 0 : index
    %c0_2 = arith.constant 0 : index
    %1 = vector.load %arg2[%c0_1, %c0_2] : memref<784x10xf32, #tpu.memory_space<vmem>>, vector<784x10xf32>
    %cst = arith.constant dense<0.000000e+00> : vector<8x10xf32>
    %2 = tpu.matmul %0, %1, %cst {dimension_numbers = #tpu.dot_dimension_numbers<[1], [0], [0], [1], [0, 0, 1, 1], [], []>} : vector<8x784xf32>, vector<784x10xf32>, vector<8x10xf32> -> vector<8x10xf32>
    %c0_3 = arith.constant 0 : index
    %c0_4 = arith.constant 0 : index
    %3 = vector.load %arg3[%c0_3, %c0_4] : memref<8x10xf32, #tpu.memory_space<vmem>>, vector<8x10xf32>
    tpu.vector_store %arg3[%c0_3, %c0_4], %2 {strides = array<i32>} : memref<8x10xf32, #tpu.memory_space<vmem>>, vector<8x10xf32>,
    return
  }
  func.func @transform_0(%arg0: i32) -> (i32, i32) {
    %c0_i32 = arith.constant 0 : i32
    %c0_i32_0 = arith.constant 0 : i32
    return %arg0, %c0_i32 : i32, i32
  }
  func.func @transform_1(%arg0: i32) -> (i32, i32) {
    %c0_i32 = arith.constant 0 : i32
    %c0_i32_0 = arith.constant 0 : i32
    %c0_i32_1 = arith.constant 0 : i32
    return %c0_i32, %c0_i32_0 : i32, i32
  }
  func.func @transform_2(%arg0: i32) -> (i32, i32) {
    %c0_i32 = arith.constant 0 : i32
    %c0_i32_0 = arith.constant 0 : i32
    return %arg0, %c0_i32 : i32, i32
  }
}

</mosaic_0001>

<bundles_post_ra>
// kernel: linear_forward.1
= control target key start
LH: loop header
LB: loop body
LE: loop exit
PB: predicated region body
PF: predicated region fallthrough
CT: control target
= control target key end

     0   :  { %s894_s0 = inlined_call_operand.vmem [shape: f32[8,784], index: 0, kind: input, shape index: {}]   ;;  %s895_s1 = inlined_call_operand.vmem [shape: f32[784,10], index: 1, kind: input, shape index: {}]   ;;  %s896_s2 = inlined_call_operand.hbm [shape: f32[8,10], index: 2, kind: output, shape index: {}]  }
   0x1   :  { %v50_v0 = vld [vmem:[%s895_s1 + $0xf8] sm:$0xff]  ;;  %v49_v4 = vld [vmem:[%s895_s1 + $0xf0] sm:$0xff]  ;;  %v48_v8 = vld [vmem:[%s895_s1 + $0xe8] sm:$0xff] }
   0x2   :  { %v82_v1 = vld [vmem:[%s895_s1 + $0x1f8] sm:$0xff]  ;;  %418 = vmatprep.subr.mxu0 %v50_v0  ;;  %v81_v5 = vld [vmem:[%s895_s1 + $0x1f0] sm:$0xff]  ;;  %v80_v9 = vld [vmem:[%s895_s1 + $0x1e8] sm:$0xff] }
   0x3   :  { %v34_v2 = vld [vmem:[%s895_s1 + $0x78] sm:$0xff]  ;;  %453 = vmatprep.subr.mxu1 %v82_v1  ;;  %v33_v6 = vld [vmem:[%s895_s1 + $0x70] sm:$0xff]  ;;  %v32_v10 = vld [vmem:[%s895_s1 + $0x68] sm:$0xff] }
   0x4   :  { %v66_v3 = vld [vmem:[%s895_s1 + $0x178] sm:$0xff]  ;;  %419 = vmatpush3.msra.mxu0 %v34_v2  ;;  %v65_v7 = vld [vmem:[%s895_s1 + $0x170] sm:$0xff]  ;;  %v64_v11 = vld [vmem:[%s895_s1 + $0x168] sm:$0xff] }
   0x5   :  { %454 = vmatpush3.msra.mxu1 %v66_v3  ;;  %420 = vmatprep.subr.mxu0 %v49_v4  ;;  %v47_v12 = vld [vmem:[%s895_s1 + $0xe0] sm:$0xff]  ;;  %v46_v16 = vld [vmem:[%s895_s1 + $0xd8] sm:$0xff]  ;;  %v45_v20 = vld [vmem:[%s895_s1 + $0xd0] sm:$0xff] }
   0x6   :  { %455 = vmatprep.subr.mxu1 %v81_v5  ;;  %421 = vmatpush3.msra.mxu0 %v33_v6  ;;  %v79_v13 = vld [vmem:[%s895_s1 + $0x1e0] sm:$0xff]  ;;  %v78_v17 = vld [vmem:[%s895_s1 + $0x1d8] sm:$0xff]  ;;  %v77_v21 = vld [vmem:[%s895_s1 + $0x1d0] sm:$0xff] }
   0x7   :  { %456 = vmatpush3.msra.mxu1 %v65_v7  ;;  %422 = vmatprep.subr.mxu0 %v48_v8  ;;  %v31_v14 = vld [vmem:[%s895_s1 + $0x60] sm:$0xff]  ;;  %v30_v18 = vld [vmem:[%s895_s1 + $0x58] sm:$0xff]  ;;  %v29_v22 = vld [vmem:[%s895_s1 + $0x50] sm:$0xff] }
   0x8   :  { %457 = vmatprep.subr.mxu1 %v80_v9  ;;  %v63_v15 = vld [vmem:[%s895_s1 + $0x160] sm:$0xff]  ;;  %423 = vmatpush3.msra.mxu0 %v32_v10  ;;  %v62_v19 = vld [vmem:[%s895_s1 + $0x158] sm:$0xff]  ;;  %v61_v23 = vld [vmem:[%s895_s1 + $0x150] sm:$0xff] }
   0x9   :  { %458 = vmatpush3.msra.mxu1 %v64_v11  ;;  %424 = vmatprep.subr.mxu0 %v47_v12  ;;  %v44_v24 = vld [vmem:[%s895_s1 + $0xc8] sm:$0xff]  ;;  %v43_v28 = vld [vmem:[%s895_s1 + $0xc0] sm:$0xff]  ;;  %v42_v32 = vld [vmem:[%s895_s1 + $0xb8] sm:$0xff] }
   0xa   :  { %459 = vmatprep.subr.mxu1 %v79_v13  ;;  %425 = vmatpush3.msra.mxu0 %v31_v14  ;;  %v76_v25 = vld [vmem:[%s895_s1 + $0x1c8] sm:$0xff]  ;;  %v75_v29 = vld [vmem:[%s895_s1 + $0x1c0] sm:$0xff]  ;;  %v74_v33 = vld [vmem:[%s895_s1 + $0x1b8] sm:$0xff] }
   0xb   :  { %460 = vmatpush3.msra.mxu1 %v63_v15  ;;  %426 = vmatprep.subr.mxu0 %v46_v16  ;;  %v28_v26 = vld [vmem:[%s895_s1 + $0x48] sm:$0xff]  ;;  %v27_v30 = vld [vmem:[%s895_s1 + $0x40] sm:$0xff]  ;;  %v26_v34 = vld [vmem:[%s895_s1 + $0x38] sm:$0xff] }
   0xc   :  { %461 = vmatprep.subr.mxu1 %v78_v17  ;;  %427 = vmatpush3.msra.mxu0 %v30_v18  ;;  %v60_v27 = vld [vmem:[%s895_s1 + $0x148] sm:$0xff]  ;;  %v59_v31 = vld [vmem:[%s895_s1 + $0x140] sm:$0xff]  ;;  %v58_v35 = vld [vmem:[%s895_s1 + $0x138] sm:$0xff] }
   0xd   :  { %462 = vmatpush3.msra.mxu1 %v62_v19  ;;  %428 = vmatprep.subr.mxu0 %v45_v20  ;;  %v41_v36 = vld [vmem:[%s895_s1 + $0xb0] sm:$0xff]  ;;  %v40_v40 = vld [vmem:[%s895_s1 + $0xa8] sm:$0xff]  ;;  %v39_v44 = vld [vmem:[%s895_s1 + $0xa0] sm:$0xff] }
   0xe   :  { %463 = vmatprep.subr.mxu1 %v77_v21  ;;  %429 = vmatpush3.msra.mxu0 %v29_v22  ;;  %v73_v37 = vld [vmem:[%s895_s1 + $0x1b0] sm:$0xff]  ;;  %v72_v41 = vld [vmem:[%s895_s1 + $0x1a8] sm:$0xff]  ;;  %v71_v45 = vld [vmem:[%s895_s1 + $0x1a0] sm:$0xff] }
   0xf   :  { %464 = vmatpush3.msra.mxu1 %v61_v23  ;;  %430 = vmatprep.subr.mxu0 %v44_v24  ;;  %v25_v38 = vld [vmem:[%s895_s1 + $0x30] sm:$0xff]  ;;  %v24_v42 = vld [vmem:[%s895_s1 + $0x28] sm:$0xff]  ;;  %v23_v46 = vld [vmem:[%s895_s1 + $0x20] sm:$0xff] }
  0x10   :  { %465 = vmatprep.subr.mxu1 %v76_v25  ;;  %431 = vmatpush3.msra.mxu0 %v28_v26  ;;  %v57_v39 = vld [vmem:[%s895_s1 + $0x130] sm:$0xff]  ;;  %v56_v43 = vld [vmem:[%s895_s1 + $0x128] sm:$0xff]  ;;  %v55_v47 = vld [vmem:[%s895_s1 + $0x120] sm:$0xff] }
  0x11   :  { %466 = vmatpush3.msra.mxu1 %v60_v27  ;;  %432 = vmatprep.subr.mxu0 %v43_v28  ;;  %v38_v48 = vld [vmem:[%s895_s1 + $0x98] sm:$0xff]  ;;  %v37_v52 = vld [vmem:[%s895_s1 + $0x90] sm:$0xff]  ;;  %v36_v56 = vld [vmem:[%s895_s1 + $0x88] sm:$0xff] }
  0x12   :  { %467 = vmatprep.subr.mxu1 %v75_v29  ;;  %433 = vmatpush3.msra.mxu0 %v27_v30  ;;  %v70_v49 = vld [vmem:[%s895_s1 + $0x198] sm:$0xff]  ;;  %v69_v53 = vld [vmem:[%s895_s1 + $0x190] sm:$0xff]  ;;  %v68_v57 = vld [vmem:[%s895_s1 + $0x188] sm:$0xff] }
  0x13   :  { %468 = vmatpush3.msra.mxu1 %v59_v31  ;;  %434 = vmatprep.subr.mxu0 %v42_v32  ;;  %v22_v50 = vld [vmem:[%s895_s1 + $0x18] sm:$0xff]  ;;  %v21_v54 = vld [vmem:[%s895_s1 + $0x10] sm:$0xff]  ;;  %v20_v58 = vld [vmem:[%s895_s1 + $0x8] sm:$0xff] }
  0x14   :  { %469 = vmatprep.subr.mxu1 %v74_v33  ;;  %435 = vmatpush3.msra.mxu0 %v26_v34  ;;  %v54_v51 = vld [vmem:[%s895_s1 + $0x118] sm:$0xff]  ;;  %v53_v55 = vld [vmem:[%s895_s1 + $0x110] sm:$0xff]  ;;  %v52_v59 = vld [vmem:[%s895_s1 + $0x108] sm:$0xff] }
  0x15   :  { %470 = vmatpush3.msra.mxu1 %v58_v35  ;;  %436 = vmatprep.subr.mxu0 %v41_v36  ;;  %v35_v60 = vld [vmem:[%s895_s1 + $0x80] sm:$0xff]  ;;  %v13_v63 = vld [vmem:[%s894_s0 + $0x8] sm:$0xff]  ;;  %v15_v1 = vld [vmem:[%s894_s0 + $0x18] sm:$0xff] }
  0x16   :  { %471 = vmatprep.subr.mxu1 %v73_v37  ;;  %437 = vmatpush3.msra.mxu0 %v25_v38  ;;  %v67_v61 = vld [vmem:[%s895_s1 + $0x180] sm:$0xff]  ;;  %v14_v3 = vld [vmem:[%s894_s0 + $0x10] sm:$0xff]  ;;  %v114_v4 = vld [vmem:[%s895_s1 + $0x2f8] sm:$0xff] }
  0x17   :  { %472 = vmatpush3.msra.mxu1 %v57_v39  ;;  %438 = vmatprep.subr.mxu0 %v40_v40  ;;  %v19_v62 = vld [vmem:[%s895_s1] sm:$0xff]  ;;  %v98_v5 = vld [vmem:[%s895_s1 + $0x278] sm:$0xff]  ;;  %v17_v6 = vld [vmem:[%s894_s0 + $0x28] sm:$0xff] }
  0x18   :  { %473 = vmatprep.subr.mxu1 %v72_v41  ;;  %439 = vmatpush3.msra.mxu0 %v24_v42  ;;  %v51_v0 = vld [vmem:[%s895_s1 + $0x100] sm:$0xff]  ;;  %v113_v7 = vld [vmem:[%s895_s1 + $0x2f0] sm:$0xff]  ;;  %v116_v8 = vld [vmem:[%s895_s1 + $0x308] sm:$0xff] }
  0x19   :  { %474 = vmatpush3.msra.mxu1 %v56_v43  ;;  %440 = vmatprep.subr.mxu0 %v39_v44  ;;  %v12_v2 = vld [vmem:[%s894_s0] sm:$0xff]  ;;  %v97_v9 = vld [vmem:[%s895_s1 + $0x270] sm:$0xff] }
  0x1a   :  { %475 = vmatprep.subr.mxu1 %v71_v45  ;;  %441 = vmatpush3.msra.mxu0 %v23_v46 }
  0x1b   :  { %476 = vmatpush3.msra.mxu1 %v55_v47  ;;  %442 = vmatprep.subr.mxu0 %v38_v48 }
  0x1c   :  { %477 = vmatprep.subr.mxu1 %v70_v49  ;;  %443 = vmatpush3.msra.mxu0 %v22_v50 }
  0x1d   :  { %478 = vmatpush3.msra.mxu1 %v54_v51  ;;  %444 = vmatprep.subr.mxu0 %v37_v52 }
  0x1e   :  { %479 = vmatprep.subr.mxu1 %v69_v53  ;;  %445 = vmatpush3.msra.mxu0 %v21_v54 }
  0x1f   :  { %480 = vmatpush3.msra.mxu1 %v53_v55  ;;  %446 = vmatprep.subr.mxu0 %v36_v56 }
  0x20   :  { %481 = vmatprep.subr.mxu1 %v68_v57  ;;  %447 = vmatpush3.msra.mxu0 %v20_v58 }
  0x21   :  { %482 = vmatpush3.msra.mxu1 %v52_v59  ;;  %448 = vmatprep.subr.mxu0 %v35_v60 }
  0x22   :  { %483 = vmatprep.subr.mxu1 %v67_v61  ;;  %449 = vmatpush3.msra.mxu0 %v19_v62 }
  0x23   :  { %185 = vmatprep.mubr.f32.mxu0 %v13_v63  ;;  %484 = vmatpush3.msra.mxu1 %v51_v0 }
  0x24   :  { %255 = vmatprep.mubr.f32.mxu1 %v15_v1  ;;  %186 = vmatmul.mubr.f32.vlgmr.msra.gmra.mxu0 %v12_v2 }
  0x25   :  { %256 = vmatmul.mubr.f32.vlgmr.msra.gmra.mxu1 %v14_v3  ;;  %488 = vmatprep.subr.mxu0 %v114_v4 }
  0x26   :  { %325 = vmatprep.mubr.f32.mxu0 %v17_v6 }
  0x27   :  { %7 = vsyncpa [#allocation3], 0  ;;  %489 = vmatpush3.msra.mxu0 %v98_v5  ;;  %v112_v10 = vld [vmem:[%s895_s1 + $0x2e8] sm:$0xff]  ;;  %v558_v11 = vmov 0.0   ;;  %v115_v12 = vld [vmem:[%s895_s1 + $0x300] sm:$0xff]  ;;  %vm117_vm0 = vcmask 130048  }
  0x28   :  { %526 = vmatprep.subr.mxu1 %v558_v11  ;;  %490 = vmatprep.subr.mxu0 %v113_v7  ;;  %v96_v13 = vld [vmem:[%s895_s1 + $0x268] sm:$0xff]  ;;  %v111_v14 = vld [vmem:[%s895_s1 + $0x2e0] sm:$0xff]  ;;  %v18_v15 = vld [vmem:[%s894_s0 + $0x30] sm:$0xff]  ;;  %vm559_vm1 = vmmov 0   ;;  %vm401_vm2 = vcmask 80896  }
  0x29   :  { %527 = vmatpush3.msra.mxu1 %v116_v8  ;;  %491 = vmatpush3.msra.mxu0 %v97_v9  ;;  %v95_v16 = vld [vmem:[%s895_s1 + $0x260] sm:$0xff]  ;;  %v110_v17 = vld [vmem:[%s895_s1 + $0x2d8] sm:$0xff]  ;;  %v109_v19 = vld [vmem:[%s895_s1 + $0x2d0] sm:$0xff] }
  0x2a   :  { %528 = vmatprep.subr.mxu1 %v558_v11  ;;  %492 = vmatprep.subr.mxu0 %v112_v10  ;;  %v94_v18 = vld [vmem:[%s895_s1 + $0x258] sm:$0xff]  ;;  %v93_v20 = vld [vmem:[%s895_s1 + $0x250] sm:$0xff]  ;;  %v108_v21 = vld [vmem:[%s895_s1 + $0x2c8] sm:$0xff] }
  0x2b   :  { %529 = vmatpush3.msra.mxu1 %v115_v12  ;;  %493 = vmatpush3.msra.mxu0 %v96_v13  ;;  %v92_v22 = vld [vmem:[%s895_s1 + $0x248] sm:$0xff]  ;;  %v107_v23 = vld [vmem:[%s895_s1 + $0x2c0] sm:$0xff]  ;;  %v106_v25 = vld [vmem:[%s895_s1 + $0x2b8] sm:$0xff] }
  0x2c   :  { %530 = vmatprep.mubr.msk.f32.mxu1 %vm559_vm1, %v558_v11  ;;  %494 = vmatprep.subr.mxu0 %v111_v14  ;;  %v91_v24 = vld [vmem:[%s895_s1 + $0x240] sm:$0xff]  ;;  %v90_v26 = vld [vmem:[%s895_s1 + $0x238] sm:$0xff]  ;;  %v105_v27 = vld [vmem:[%s895_s1 + $0x2b0] sm:$0xff] }
  0x2d   :  { %531 = vmatmul.mubr.msk.f32.vlgmr.msra.gmra.mxu1 %vm117_vm0, %v18_v15  ;;  %495 = vmatpush3.msra.mxu0 %v95_v16  ;;  %v89_v28 = vld [vmem:[%s895_s1 + $0x230] sm:$0xff]  ;;  %v104_v29 = vld [vmem:[%s895_s1 + $0x2a8] sm:$0xff]  ;;  %v103_v31 = vld [vmem:[%s895_s1 + $0x2a0] sm:$0xff] }
  0x2e   :  { %496 = vmatprep.subr.mxu0 %v110_v17  ;;  %v88_v30 = vld [vmem:[%s895_s1 + $0x228] sm:$0xff]  ;;  %v87_v32 = vld [vmem:[%s895_s1 + $0x220] sm:$0xff]  ;;  %v102_v33 = vld [vmem:[%s895_s1 + $0x298] sm:$0xff] }
  0x2f   :  { %497 = vmatpush3.msra.mxu0 %v94_v18  ;;  %v86_v34 = vld [vmem:[%s895_s1 + $0x218] sm:$0xff]  ;;  %v101_v35 = vld [vmem:[%s895_s1 + $0x290] sm:$0xff]  ;;  %v100_v37 = vld [vmem:[%s895_s1 + $0x288] sm:$0xff] }
  0x30   :  { %498 = vmatprep.subr.mxu0 %v109_v19  ;;  %v85_v36 = vld [vmem:[%s895_s1 + $0x210] sm:$0xff]  ;;  %v84_v38 = vld [vmem:[%s895_s1 + $0x208] sm:$0xff]  ;;  %v99_v39 = vld [vmem:[%s895_s1 + $0x280] sm:$0xff] }
  0x31   :  { %499 = vmatpush3.msra.mxu0 %v93_v20  ;;  %v83_v40 = vld [vmem:[%s895_s1 + $0x200] sm:$0xff]  ;;  %s560_s1 = smov [#allocation2]  }
  0x32   :  { %500 = vmatprep.subr.mxu0 %v108_v21  ;;  %v16_v41 = vld [vmem:[%s894_s0 + $0x20] sm:$0xff]  ;;  %s409_s23 = sshll.u32 %s560_s1, 4  ;;  %s410_s23 = int_to_ptr.vmem [resolvable:$true] %s409_s23 }
  0x33   :  { %501 = vmatpush3.msra.mxu0 %v92_v22  ;;  %s536_s0 = scalar_lea.vmem %s410_s23, 128  ;;  %p541_p1 = scmp.lt.s32.totalorder %s410_s23, %s410_s23 }
  0x34   :  { %502 = vmatprep.subr.mxu0 %v107_v23  ;;  %p537_p0 = scmp.ne.s32.totalorder %s410_s23, %s536_s0  ;;  %p542_p2 = scmp.lt.s32.totalorder %s536_s0, %s536_s0 }
  0x35   :  { %503 = vmatpush3.msra.mxu0 %v91_v24 }
  0x36   :  { %504 = vmatprep.subr.mxu0 %v106_v25  ;;  %p543_p3 = por %p542_p2, %p541_p1 }
  0x37   :  { %505 = vmatpush3.msra.mxu0 %v90_v26 }
  0x38   :  { %506 = vmatprep.subr.mxu0 %v105_v27  ;;  %p544_p4 = pnand %p543_p3, %p537_p0 }
  0x39   :  { %507 = vmatpush3.msra.mxu0 %v89_v28 }
  0x3a   :  { %508 = vmatprep.subr.mxu0 %v104_v29 }
  0x3b   :  { %509 = vmatpush3.msra.mxu0 %v88_v30 }
  0x3c   :  { %510 = vmatprep.subr.mxu0 %v103_v31 }
  0x3d   :  { %511 = vmatpush3.msra.mxu0 %v87_v32 }
  0x3e   :  { %512 = vmatprep.subr.mxu0 %v102_v33 }
  0x3f   :  { %513 = vmatpush3.msra.mxu0 %v86_v34 }
  0x40   :  { %514 = vmatprep.subr.mxu0 %v101_v35 }
  0x41   :  { %515 = vmatpush3.msra.mxu0 %v85_v36 }
  0x42   :  { %516 = vmatprep.subr.mxu0 %v100_v37 }
  0x43   :  { %517 = vmatpush3.msra.mxu0 %v84_v38 }
  0x44   :  { %518 = vmatprep.subr.mxu0 %v99_v39 }
  0x45   :  { %519 = vmatpush3.msra.mxu0 %v83_v40 }
  0x46   :  { %326 = vmatmul.mubr.f32.vlgmr.msra.gmra.mxu0 %v16_v41 }
  0xe4   :  { %v450_v46 = vpop.f32.mrf.mxu0 }
  0xe5   :  { %v485_v42 = vpop.f32.mrf.mxu1 }
  0xe6   :  { %v451_v47 = vpop.f32.mrf.mxu0 }
  0xe7   :  { %v486_v43 = vpop.f32.mrf.mxu1  ;;  %v452_v48 = vadd.f32 %v451_v47, %v450_v46 }
  0xe8   :  { %v487_v49 = vadd.f32 %v486_v43, %v485_v42 }
  0xea   :  { %v258_v52 = vadd.f32 %v487_v49, %v452_v48 }
  0xed   :  { %v397_v44 = vpop.f32.mrf.mxu1 }
  0xef   :  { %v532_v45 = vpop.f32.mrf.mxu1 }
 0x106   :  { %v520_v50 = vpop.f32.mrf.mxu0 }
 0x108   :  { %v521_v51 = vpop.f32.mrf.mxu0 }
 0x109   :  { %v522_v53 = vadd.f32 %v521_v51, %v520_v50 }
 0x10b   :  { %v328_v54 = vadd.f32 %v522_v53, %v258_v52 }
 0x10d   :  { %v398_v55 = vadd.f32 %v397_v44, %v328_v54 }
 0x10f   :  { %402 = vst.msk [vmem:[#allocation2] sm:$0xff] %vm401_vm2, %v398_v55 }
 0x110   :  { %547 = shalt.err (!%p544_p4)
}
 0x111   :  { %412 = dma.vmem_to_hbm [thread:$0]  %s410_s23, 128, %s896_s2, [#allocation3]  }
 0x112   :  { %556 = dma.done.wait [#allocation3], 128  }
 0x113   :  { %557 = vsyncadd [#allocation3], 4294967168 }
 0x114   :  { %416 = vsyncpa [#allocation3], 1 }

</bundles_post_ra>
